<compile_context>
chip_gen: v6e
topology: v6e:2x2x1
jax: 0.10.0
libtpu: 0.0.40
codegen_flags: <defaults>
</compile_context>

<pallas_src>
import functools

import jax
import jax.numpy as jnp
from jax import lax
from jax.experimental import pallas as pl
from jax.experimental.pallas import tpu as pltpu

_MIB = 1024 * 1024
_DMA_WINDOW = 16          # in-flight row DMAs in the small-sequence path


def _round_up(x: int, m: int) -> int:
    return ((x + m - 1) // m) * m


def _tpu_target():
    """Returns (vmem_capacity_bytes, mxu_rows, is_v7x) with safe fallbacks."""
    kind = ""
    try:
        dev = jax.devices()[0]
        if dev.platform == "tpu":
            kind = dev.device_kind.lower()
    except Exception:
        pass
    vmem_cap = 64 * _MIB                       # conservative default (v7x per-core)
    try:
        vmem_cap = int(pltpu.get_tpu_info().vmem_capacity_bytes)
    except Exception:
        pass
    big_mxu = any(t in kind for t in ("v6", "v7", "7x"))
    is_v7x = ("v7" in kind) or ("7x" in kind)
    return vmem_cap, (256 if big_mxu else 128), is_v7x


# ----------------------------------------------------------------------------
# Path A: small sequence (decode-style).  Table stays in HBM; scalar-prefetched
# ids drive per-row DMAs directly into the output tile.
# ----------------------------------------------------------------------------
def _dma_gather_kernel(ids_ref, table_hbm, out_ref, sems, *, tq):
    base = pl.program_id(0) * tq
    w = sems.shape[0]

    def row_copy(i):
        row = ids_ref[base + i]
        return pltpu.make_async_copy(
            table_hbm.at[pl.ds(row, 1), :],
            out_ref.at[pl.ds(i, 1), :],
            sems.at[i % w],
        )

    # Prime a bounded window of in-flight row DMAs.
    @pl.loop(0, min(w, tq))
    def _(i):
        row_copy(i).start()

    # Rolling window: wait row i, then launch row i + w.
    @pl.loop(0, tq)
    def _(i):
        row_copy(i).wait()

        @pl.when(i + w < tq)
        def _():
            row_copy(i + w).start()


# ----------------------------------------------------------------------------
# Path B: bulk gather.  VMEM-resident table chunk (constant across the inner
# sequence axis), gather expressed as a one-hot matmul on the MXU.
# ----------------------------------------------------------------------------
def _onehot_gather_kernel(ids_ref, table_ref, out_ref, *, tq, ids_resident):
    max_pos = table_ref.shape[0]
    if ids_resident:
        # ids block is the whole padded sequence (DMA'd once); slice our tile.
        start = pl.multiple_of(pl.program_id(1) * tq, tq)
        ids = ids_ref[pl.ds(start, tq), :]                       # (tq, 1)
    else:
        ids = ids_ref[...]                                       # (tq, 1)
    pos = lax.broadcasted_iota(jnp.int32, (tq, max_pos), 1)      # (tq, max_pos)
    onehot = (pos == ids).astype(table_ref.dtype)                # exact 0/1
    # Row gather as a one-hot matmul: exactly one nonzero term per output ->
    # bit-exact selection of table rows regardless of dtype.
    out_ref[...] = jnp.dot(
        onehot, table_ref[...], preferred_element_type=jnp.float32
    ).astype(out_ref.dtype)


def learned_positional_embedding(table: jax.Array, position_ids: jax.Array) -> jax.Array:
    """Gather rows of `table` at `position_ids` with Pallas TPU kernels.

    table:        [max_position_embeddings, hidden_size]
    position_ids: [...] integer (any shape; flattened internally)
    returns:      [..., hidden_size] in table.dtype
    """
    max_pos, hidden = table.shape
    itemsize = jnp.dtype(table.dtype).itemsize

    orig_shape = position_ids.shape
    # NOTE: nn.Embedding raises on out-of-range ids; we clamp instead.
    ids = jnp.clip(position_ids.reshape(-1).astype(jnp.int32), 0, max_pos - 1)
    seq_len = int(ids.shape[0])
    if seq_len == 0:
        return jnp.zeros((*orig_shape, hidden), table.dtype)

    vmem_cap, mxu_rows, is_v7x = _tpu_target()

    # -------------------- Path A: seq_len << max_pos --------------------
    if seq_len * 8 <= max_pos and seq_len <= 4096:
        tq = min(128, _round_up(seq_len, 8))
        padded_seq = _round_up(seq_len, tq)
        ids_p = jnp.pad(ids, (0, padded_seq - seq_len))          # pad with row 0

        grid_spec = pltpu.PrefetchScalarGridSpec(
            num_scalar_prefetch=1,
            grid=(padded_seq // tq,),
            in_specs=[pl.BlockSpec(memory_space=pl.ANY)],        # table stays in HBM
            out_specs=pl.BlockSpec((tq, hidden), lambda s, ids_ref: (s, 0)),
            scratch_shapes=[pltpu.SemaphoreType.DMA((_DMA_WINDOW,))],
        )
        out = pl.pallas_call(
            functools.partial(_dma_gather_kernel, tq=tq),
            out_shape=jax.ShapeDtypeStruct((padded_seq, hidden), table.dtype),
            grid_spec=grid_spec,
            compiler_params=pltpu.CompilerParams(
                dimension_semantics=("arbitrary",)),
            cost_estimate=pl.CostEstimate(
                flops=0, transcendentals=0,
                bytes_accessed=int(2 * padded_seq * hidden * itemsize
                                   + padded_seq * 4)),
        )(ids_p, table)
        return out[:seq_len].reshape(*orig_shape, hidden)

    # -------------------- Path B: bulk one-hot-matmul gather --------------------
    # Sequence tile: match MXU height (256 on v6e/v7x, 128 elsewhere).
    if seq_len >= 256 and mxu_rows == 256:
        tq = 256
    elif seq_len >= 128:
        tq = 128
    else:
        tq = _round_up(seq_len, 8)
    # Keep the (tq, max_pos) iota + one-hot working set well under VMEM even
    # for very large position tables.
    while tq > 8 and tq * max_pos * (4 + itemsize) > int(0.35 * vmem_cap):
        tq //= 2
    padded_seq = _round_up(seq_len, tq)
    num_seq_tiles = padded_seq // tq

    # Position ids: single VMEM-resident block (DMA'd once) unless the padded
    # sequence would make the lane-padded (N,1) block large.
    ids_resident = padded_seq * 128 * 4 <= 2 * _MIB
    ids_vmem = (padded_seq * 128 * 4) if ids_resident else (2 * tq * 128 * 4)

    # Hidden chunking with full working-set accounting (review item).
    lane_gran = 256 if (mxu_rows == 256 and hidden % 256 == 0) else 128
    fixed = (tq * max_pos * (4 + itemsize)        # int32 iota + one-hot (table dtype)
             + ids_vmem                           # ids block
             + 2 * _MIB)                          # headroom

    def needed(th):
        return (2 * max_pos * th * itemsize       # resident table chunk (double-buffered)
                + 2 * tq * th * itemsize          # output tile (double-buffered)
                + tq * th * 4                     # f32 matmul result
                + fixed)

    vmem_target = int(vmem_cap * 0.55)            # gen-aware: ~35 MiB v7x, ~70 MiB v5e/v6e
    th = hidden
    while (needed(th) > vmem_target and th % 2 == 0
           and (th // 2) % lane_gran == 0):
        th //= 2
    # TODO(synk): row-chunked / HBM-streaming fallback if needed(th) still
    # exceeds VMEM (gigantic max_pos with a hidden size not splittable by 128).

    # On v7x, keep at least two hidden tiles so the two TensorCores split the
    # table HBM reads instead of each re-reading the whole table.
    if (is_v7x and th == hidden and hidden % (2 * lane_gran) == 0
            and max_pos * hidden * itemsize > 4 * _MIB):
        th //= 2
    num_hid_tiles = hidden // th

    ids_p = jnp.pad(ids, (0, padded_seq - seq_len)).reshape(padded_seq, 1)

    if ids_resident:
        ids_spec = pl.BlockSpec((padded_seq, 1), lambda h, s: (0, 0))
    else:
        ids_spec = pl.BlockSpec((tq, 1), lambda h, s: (s, 0))

    vmem_limit = int(max(32 * _MIB,
                         min(int(vmem_cap * 0.9), needed(th) + 2 * _MIB)))

    cost = pl.CostEstimate(
        flops=int(2 * padded_seq * max_pos * hidden),
        transcendentals=0,
        bytes_accessed=int(max_pos * hidden * itemsize        # table read
                           + padded_seq * 4                   # ids read
                           + padded_seq * hidden * itemsize), # output write
    )

    out = pl.pallas_call(
        functools.partial(_onehot_gather_kernel, tq=tq, ids_resident=ids_resident),
        out_shape=jax.ShapeDtypeStruct((padded_seq, hidden), table.dtype),
        grid=(num_hid_tiles, num_seq_tiles),
        in_specs=[
            ids_spec,
            # Table chunk: constant across the inner (seq) axis, so it is
            # DMA'd from HBM once per hidden chunk and stays VMEM-resident.
            pl.BlockSpec((max_pos, th), lambda h, s: (0, h)),
        ],
        out_specs=pl.BlockSpec((tq, th), lambda h, s: (s, h)),
        compiler_params=pltpu.CompilerParams(
            dimension_semantics=("parallel", "parallel"),
            vmem_limit_bytes=vmem_limit,
        ),
        cost_estimate=cost,
    )(ids_p, table)

    return out[:seq_len].reshape(*orig_shape, hidden)


class LearnedPositionalEmbeddingJAX:
    """Mirror of the PyTorch module (eval-mode forward)."""

    def __init__(self, max_position_embeddings: int, hidden_size: int,
                 dropout: float = 0.1, key=None):
        if key is None:
            key = jax.random.PRNGKey(0)
        # nn.Embedding default init ~ N(0, 1); deterministic synthetic weights.
        self.weight = jax.random.normal(
            key, (max_position_embeddings, hidden_size), dtype=jnp.float32)
        self.dropout_p = dropout  # identity in eval mode

    def forward(self, position_ids=None, seq_length=None):
        if position_ids is None:
            position_ids = jnp.arange(seq_length, dtype=jnp.int32)
        return learned_positional_embedding(self.weight, position_ids)


if __name__ == "__main__":
    max_position_embeddings = 64
    hidden_size = 32
    seq_length = 8

    key = jax.random.PRNGKey(0)
    module = LearnedPositionalEmbeddingJAX(max_position_embeddings, hidden_size, key=key)

    # Case 1: position_ids is None -> arange(seq_length)    (small-seq DMA-gather path)
    out_default = module.forward(seq_length=seq_length)

    # Case 2: explicit, non-trivial position_ids            (small-seq DMA-gather path)
    position_ids = jnp.array([3, 0, 7, 5, 1, 63, 2, 9], dtype=jnp.int32)
    out_explicit = module.forward(position_ids=position_ids)

    # Case 3: longer sequence                               (one-hot matmul path)
    long_ids = jnp.arange(256, dtype=jnp.int32) % max_position_embeddings
    out_long = module.forward(position_ids=long_ids)

    # Case 4: batched [batch, seq] position ids             (shape handling)
    batched_ids = (jnp.arange(16, dtype=jnp.int32).reshape(2, 8)
                   % max_position_embeddings)
    out_batched = module.forward(position_ids=batched_ids)

    jax.block_until_ready(out_default)
    jax.block_until_ready(out_explicit)
    jax.block_until_ready(out_long)
    jax.block_until_ready(out_batched)

    # Reference check (plain JAX gather == nn.Embedding lookup semantics).
    ref_default = jnp.take(module.weight, jnp.arange(seq_length), axis=0)
    ref_explicit = jnp.take(module.weight, position_ids, axis=0)
    ref_long = jnp.take(module.weight, long_ids, axis=0)
    ref_batched = jnp.take(module.weight, batched_ids, axis=0)

    assert out_default.shape == (seq_length, hidden_size)
    assert out_explicit.shape == (seq_length, hidden_size)
    assert out_long.shape == (256, hidden_size)
    assert out_batched.shape == (2, 8, hidden_size)
    assert jnp.allclose(out_default, ref_default)
    assert jnp.allclose(out_explicit, ref_explicit)
    assert jnp.allclose(out_long, ref_long)
    assert jnp.allclose(out_batched, ref_batched)

    print("KERNEL_OK")
</pallas_src>

<mosaic_0001>
module attributes {stable_mosaic.version = 11 : i64} {
  func.func @_dma_gather_kernel(%arg0: i32, %arg1: memref<8xi32, #tpu.memory_space<smem>>, %arg2: memref<64x32xf32, #tpu.memory_space<any>>, %arg3: memref<8x32xf32, #tpu.memory_space<vmem>>, %arg4: memref<16x!tpu.dma_semaphore, #tpu.memory_space<semaphore_mem>>) attributes {dimension_semantics = [#tpu.dimension_semantics<arbitrary>], iteration_bounds = array<i64: 1>, scalar_prefetch = 1 : i64, scratch_operands = 1 : i64, tpu.core_type = #tpu.core_type<tc>, window_params = [{}, {transform_indices = @transform_1, window_bounds = array<i64: 8, 32>}]} {
    %c8_i32 = arith.constant 8 : i32
    %0 = arith.muli %arg0, %c8_i32 : i32
    %c0_i32 = arith.constant 0 : i32
    %c8_i32_0 = arith.constant 8 : i32
    %1 = arith.addi %c0_i32, %c8_i32_0 : i32
    %c1_i32 = arith.constant 1 : i32
    scf.for %arg5 = %c0_i32 to %1 step %c1_i32  : i32 {
      %c1_i32_6 = arith.constant 1 : i32
      %3 = arith.muli %arg5, %c1_i32_6 : i32
      %c0_i32_7 = arith.constant 0 : i32
      %4 = arith.addi %c0_i32_7, %3 : i32
      %5 = arith.addi %0, %4 : i32
      %6 = arith.index_cast %5 : i32 to index
      %7 = memref.load %arg1[%6] : memref<8xi32, #tpu.memory_space<smem>>
      %c16_i32 = arith.constant 16 : i32
      %c0_i32_8 = arith.constant 0 : i32
      %8 = arith.cmpi eq, %c16_i32, %c0_i32_8 : i32
      %c1_i32_9 = arith.constant 1 : i32
      %9 = arith.select %8, %c1_i32_9, %c16_i32 : i32
      %10 = arith.remsi %4, %9 : i32
      %c0_i32_10 = arith.constant 0 : i32
      %11 = arith.cmpi ne, %10, %c0_i32_10 : i32
      %c0_i32_11 = arith.constant 0 : i32
      %12 = arith.cmpi slt, %10, %c0_i32_11 : i32
      %c0_i32_12 = arith.constant 0 : i32
      %13 = arith.cmpi slt, %9, %c0_i32_12 : i32
      %14 = arith.xori %12, %13 : i1
      %15 = arith.andi %14, %11 : i1
      %16 = arith.addi %10, %9 : i32
      %17 = arith.select %15, %16, %10 : i32
      %c0_i32_13 = arith.constant 0 : i32
      %18 = tpu.memref_slice %arg2[%7, %c0_i32_13] : memref<64x32xf32, #tpu.memory_space<any>> -> memref<1x32xf32, #tpu.memory_space<any>>
      %c0_i32_14 = arith.constant 0 : i32
      %19 = tpu.memref_slice %arg3[%4, %c0_i32_14] : memref<8x32xf32, #tpu.memory_space<vmem>> -> memref<1x32xf32, #tpu.memory_space<vmem>>
      %20 = tpu.memref_slice %arg4[%17] : memref<16x!tpu.dma_semaphore, #tpu.memory_space<semaphore_mem>> -> memref<1x!tpu.dma_semaphore, #tpu.memory_space<semaphore_mem>>
      %21 = tpu.memref_squeeze %20 : memref<1x!tpu.dma_semaphore, #tpu.memory_space<semaphore_mem>> -> memref<!tpu.dma_semaphore, #tpu.memory_space<semaphore_mem>>
      tpu.enqueue_dma source(%18 : memref<1x32xf32, #tpu.memory_space<any>>) target(%19 : memref<1x32xf32, #tpu.memory_space<vmem>>) target_semaphore(%21 : memref<!tpu.dma_semaphore, #tpu.memory_space<semaphore_mem>>)
    }
    %c8_i32_1 = arith.constant 8 : i32
    %c0_i32_2 = arith.constant 0 : i32
    %c8_i32_3 = arith.constant 8 : i32
    %2 = arith.addi %c0_i32_2, %c8_i32_3 : i32
    %c1_i32_4 = arith.constant 1 : i32
    scf.for %arg5 = %c0_i32_2 to %2 step %c1_i32_4  : i32 {
      %c1_i32_6 = arith.constant 1 : i32
      %3 = arith.muli %arg5, %c1_i32_6 : i32
      %c0_i32_7 = arith.constant 0 : i32
      %4 = arith.addi %c0_i32_7, %3 : i32
      %5 = arith.addi %0, %4 : i32
      %6 = arith.index_cast %5 : i32 to index
      %7 = memref.load %arg1[%6] : memref<8xi32, #tpu.memory_space<smem>>
      %c16_i32 = arith.constant 16 : i32
      %c0_i32_8 = arith.constant 0 : i32
      %8 = arith.cmpi eq, %c16_i32, %c0_i32_8 : i32
      %c1_i32_9 = arith.constant 1 : i32
      %9 = arith.select %8, %c1_i32_9, %c16_i32 : i32
      %10 = arith.remsi %4, %9 : i32
      %c0_i32_10 = arith.constant 0 : i32
      %11 = arith.cmpi ne, %10, %c0_i32_10 : i32
      %c0_i32_11 = arith.constant 0 : i32
      %12 = arith.cmpi slt, %10, %c0_i32_11 : i32
      %c0_i32_12 = arith.constant 0 : i32
      %13 = arith.cmpi slt, %9, %c0_i32_12 : i32
      %14 = arith.xori %12, %13 : i1
      %15 = arith.andi %14, %11 : i1
      %16 = arith.addi %10, %9 : i32
      %17 = arith.select %15, %16, %10 : i32
      %c0_i32_13 = arith.constant 0 : i32
      %18 = tpu.memref_slice %arg2[%7, %c0_i32_13] : memref<64x32xf32, #tpu.memory_space<any>> -> memref<1x32xf32, #tpu.memory_space<any>>
      %c0_i32_14 = arith.constant 0 : i32
      %19 = tpu.memref_slice %arg3[%4, %c0_i32_14] : memref<8x32xf32, #tpu.memory_space<vmem>> -> memref<1x32xf32, #tpu.memory_space<vmem>>
      %20 = tpu.memref_slice %arg4[%17] : memref<16x!tpu.dma_semaphore, #tpu.memory_space<semaphore_mem>> -> memref<1x!tpu.dma_semaphore, #tpu.memory_space<semaphore_mem>>
      %21 = tpu.memref_squeeze %20 : memref<1x!tpu.dma_semaphore, #tpu.memory_space<semaphore_mem>> -> memref<!tpu.dma_semaphore, #tpu.memory_space<semaphore_mem>>
      tpu.wait_dma2 semaphore(%21 : memref<!tpu.dma_semaphore, #tpu.memory_space<semaphore_mem>>) src(%18 : memref<1x32xf32, #tpu.memory_space<any>>) dst(%19 : memref<1x32xf32, #tpu.memory_space<vmem>>)
      %c16_i32_15 = arith.constant 16 : i32
      %22 = arith.addi %4, %c16_i32_15 : i32
      %c8_i32_16 = arith.constant 8 : i32
      %23 = arith.cmpi slt, %22, %c8_i32_16 : i32
      %24 = arith.extui %23 : i1 to i32
      %c0_i32_17 = arith.constant 0 : i32
      %25 = arith.cmpi ne, %24, %c0_i32_17 : i32
      scf.if %25 {
        %c16_i32_18 = arith.constant 16 : i32
        %26 = arith.addi %4, %c16_i32_18 : i32
        %27 = arith.addi %0, %26 : i32
        %28 = arith.index_cast %27 : i32 to index
        %29 = memref.load %arg1[%28] : memref<8xi32, #tpu.memory_space<smem>>
        %c16_i32_19 = arith.constant 16 : i32
        %c0_i32_20 = arith.constant 0 : i32
        %30 = arith.cmpi eq, %c16_i32_19, %c0_i32_20 : i32
        %c1_i32_21 = arith.constant 1 : i32
        %31 = arith.select %30, %c1_i32_21, %c16_i32_19 : i32
        %32 = arith.remsi %26, %31 : i32
        %c0_i32_22 = arith.constant 0 : i32
        %33 = arith.cmpi ne, %32, %c0_i32_22 : i32
        %c0_i32_23 = arith.constant 0 : i32
        %34 = arith.cmpi slt, %32, %c0_i32_23 : i32
        %c0_i32_24 = arith.constant 0 : i32
        %35 = arith.cmpi slt, %31, %c0_i32_24 : i32
        %36 = arith.xori %34, %35 : i1
        %37 = arith.andi %36, %33 : i1
        %38 = arith.addi %32, %31 : i32
        %39 = arith.select %37, %38, %32 : i32
        %c0_i32_25 = arith.constant 0 : i32
        %40 = tpu.memref_slice %arg2[%29, %c0_i32_25] : memref<64x32xf32, #tpu.memory_space<any>> -> memref<1x32xf32, #tpu.memory_space<any>>
        %c0_i32_26 = arith.constant 0 : i32
        %41 = tpu.memref_slice %arg3[%26, %c0_i32_26] : memref<8x32xf32, #tpu.memory_space<vmem>> -> memref<1x32xf32, #tpu.memory_space<vmem>>
        %42 = tpu.memref_slice %arg4[%39] : memref<16x!tpu.dma_semaphore, #tpu.memory_space<semaphore_mem>> -> memref<1x!tpu.dma_semaphore, #tpu.memory_space<semaphore_mem>>
        %43 = tpu.memref_squeeze %42 : memref<1x!tpu.dma_semaphore, #tpu.memory_space<semaphore_mem>> -> memref<!tpu.dma_semaphore, #tpu.memory_space<semaphore_mem>>
        tpu.enqueue_dma source(%40 : memref<1x32xf32, #tpu.memory_space<any>>) target(%41 : memref<1x32xf32, #tpu.memory_space<vmem>>) target_semaphore(%43 : memref<!tpu.dma_semaphore, #tpu.memory_space<semaphore_mem>>)
      } else {
      }
    }
    %c8_i32_5 = arith.constant 8 : i32
    return
  }
  func.func @transform_1(%arg0: i32, %arg1: memref<8xi32, #tpu.memory_space<smem>>) -> (i32, i32) {
    %c0_i32 = arith.constant 0 : i32
    %c0_i32_0 = arith.constant 0 : i32
    return %arg0, %c0_i32 : i32, i32
  }
}

</mosaic_0001>

<bundles_post_ra>
// kernel: tpu_custom_call.1
= control target key start
LH: loop header
LB: loop body
LE: loop exit
PB: predicated region body
PF: predicated region fallthrough
CT: control target
= control target key end

     0   :  { %s482_s0 = inlined_call_operand.vmem [shape: s32[8], index: 0, kind: input, shape index: {}]   ;;  %s483_s1 = inlined_call_operand.vmem [shape: f32[64,32], index: 1, kind: input, shape index: {}]   ;;  %s484_s2 = inlined_call_operand.hbm [shape: f32[8,32], index: 2, kind: output, shape index: {}]  }
   0x1   :  { %s7_s11 = sshll.u32 %s482_s0, 4  ;;  %s8_s11 = int_to_ptr.vmem [resolvable:$true] %s7_s11 }
   0x2   :  { %s386_s12 = scalar_lea.vmem %s8_s11, 16  ;;  %p391_p1 = scmp.lt.s32.totalorder %s8_s11, %s8_s11 }
   0x3   :  { %p387_p0 = scmp.ne.s32.totalorder %s8_s11, %s386_s12  ;;  %p392_p2 = scmp.lt.s32.totalorder %s386_s12, %s386_s12 }
   0x5   :  { %p393_p3 = por %p392_p2, %p391_p1 }
   0x7   :  { %p394_p4 = pnand %p393_p3, %p387_p0 }
   0x9   :  { %397 = shalt.err (!%p394_p4)  }
   0xa   :  { %s440_s13 = smov [#allocation4]  }
   0xb   :  { %10 = dma.vmem_to_smem %s8_s11, 16, %s440_s13, [#allocation3] }
   0xc   :  { %426 = dma.done.wait [#allocation3], 16 }
   0xd   :  { %427 = vsyncadd [#allocation3], 4294967280 }
   0xe   :  { %12 = sfence }
   0xf   :  { %13 = vsyncpa [#allocation6], 0  ;;  %s432_s14 = smov 0  }
  0x10 LB: > { %s22_s15 = sld [smem:[#allocation4 + %s434_s14]]  ;;  %p23_p5 = scmp.lt.s32.totalorder %s434_s14, 0  ;;  %s434_s14 = sphi %s432_s14, %s20_s14  }
  0x11   : > { %s24_s0 = ssub.s32 0, %s434_s14  ;;  %s36_s23 = scalar_lea.vmem [#allocation5], %s434_s14 }
  0x12   : > { %s340_s16 = smin.u32 %s434_s14, %s24_s0 }
  0x13   : > { %s26_s17 = sand.u32 15, %s340_s16  }
  0x14   : > { %s27_s18 = ssub.s32 0, %s26_s17 }
  0x15   : > { %s486_s18 = smov (!%p23_p5, %s27_s18), %s26_s17 }
  0x16   : > { %s35_s21 = scalar_lea.vmem %s483_s1, %s22_s15  ;;  %p342_p6 = scmp.lt.s32.totalorder %s486_s18, 0 }
  0x17   : > { %s33_s22 = sadd.s32 16, %s486_s18  ;;  %v56_v0 = vld [vmem:[%s35_s21] sm:$0x1] }
  0x18   : > { %57 = vst [vmem:[%s36_s23] sm:$0x1] %v56_v0  ;;  %s488_s22 = smov (!%p342_p6, %s33_s22), %s486_s18 }
  0x19   : > { %s37_s24 = scalar_lea.sflag [#allocation2], %s488_s22 }
  0x1a   : > { %83 = vsyncadd %s37_s24, 16  ;;  %s20_s14 = sadd.s32 1, %s434_s14  }
  0x1b   : > { %p17_p7 = scmp.ge.s32.totalorder %s20_s14, 8  }
  0x1c   :  { %s463_s25 = smov (%p17_p7), 0  }
  0x1d   :  { %19 = sbr.rel (!%p17_p7) target bundleno = 16 (0x10), region = 140 }
  0x22 LB: > { %p92_p8 = scmp.lt.s32.totalorder %s438_s25, 0  ;;  %s93_s26 = ssub.s32 0, %s438_s25  ;;  %s438_s25 = sphi %s463_s25, %s89_s25  }
  0x23   : > { %s343_s27 = smin.u32 %s438_s25, %s93_s26 }
  0x24   : > { %s95_s28 = sand.u32 15, %s343_s27  }
  0x25   : > { %s96_s29 = ssub.s32 0, %s95_s28 }
  0x26   : > { %s490_s29 = smov (!%p92_p8, %s96_s29), %s95_s28 }
  0x27   : > { %p345_p9 = scmp.lt.s32.totalorder %s490_s29, 0  ;;  %s102_s30 = sadd.s32 16, %s490_s29 }
  0x29   : > { %s492_s30 = smov (!%p345_p9, %s102_s30), %s490_s29 }
  0x2a   : > { %s104_s3 = scalar_lea.sflag [#allocation2], %s492_s30 }
  0x2b   : > { %428 = dma.done.wait %s104_s3, 16 }
  0x2c   : > { %429 = vsyncadd %s104_s3, 4294967280  ;;  %s108_s4 = sadd.s32 16, %s438_s25 }
  0x2d   : > { %p346_p10 = scmp.ge.s32.totalorder %s108_s4, 8 }
  0x2e   : > { %s114_s5 = sld [smem:[#allocation4 + %s108_s4]] (!%p346_p10)  ;;  %p115_p11 = scmp.lt.s32.totalorder (!%p346_p10), %s108_s4, 0 }
  0x2f   : > { %112 = sbr.rel (%p346_p10) target bundleno = 58 (0x3a), region = 49  ;;  %s116_s6 = ssub.s32 (!%p346_p10), 0, %s108_s4 }
  0x30   : > { %s347_s7 = smin.u32 (!%p346_p10), %s116_s6, %s108_s4  ;;  %s308_s14 = scalar_lea.vmem (!%p346_p10), [#allocation5], %s438_s25 }
  0x31   : > { %s118_s8 = sand.u32 (!%p346_p10), 15, %s347_s7  }
  0x32   : > { %s119_s9 = ssub.s32 (!%p346_p10), 0, %s118_s8 }
  0x34   : > { %s494_s9 = smov (!%p115_p11, %s119_s9), %s118_s8  ;;  %s127_s12 = scalar_lea.vmem %s483_s1, %s114_s5 }
  0x35   : > { %p349_p12 = scmp.lt.s32.totalorder %s494_s9, 0  ;;  %s125_s13 = sadd.s32 16, %s494_s9  ;;  %v148_v1 = vld [vmem:[%s127_s12] sm:$0x1] }
  0x36   : > { %351 = vst [vmem:[%s308_s14 + $0x10] sm:$0x1] %v148_v1 }
  0x37   : > { %s496_s13 = smov (!%p349_p12, %s125_s13), %s494_s9 }
  0x38   : > { %s129_s15 = scalar_lea.sflag [#allocation2], %s496_s13 }
  0x39   : > { %175 = vsyncadd %s129_s15, 16 }
  0x3a PF: > { %s89_s25 = sadd.s32 1, %s438_s25  }
  0x3b   : > { %p86_p13 = scmp.ge.s32.totalorder %s89_s25, 8  }
  0x3c   :  { %s441_s0 = smov (%p86_p13), [#allocation5]  }
  0x3d   :  { %88 = sbr.rel (!%p86_p13) target bundleno = 34 (0x22), region = 151  ;;  %s182_s16 = sshll.u32 (%p86_p13), %s441_s0, 4  ;;  %s183_s16 = int_to_ptr.vmem [resolvable:$true] %s182_s16 }
  0x3e   :  { %s398_s17 = scalar_lea.vmem (%p86_p13), %s183_s16, 128  ;;  %p403_p1 = scmp.lt.s32.totalorder (%p86_p13), %s183_s16, %s183_s16 }
  0x3f   :  { %p399_p0 = scmp.ne.s32.totalorder (%p86_p13), %s183_s16, %s398_s17  ;;  %p404_p2 = scmp.lt.s32.totalorder (%p86_p13), %s398_s17, %s398_s17 }
  0x41   :  { %p405_p3 = por (%p86_p13), %p404_p2, %p403_p1 }
  0x43   :  { %p406_p4 = pnand %p405_p3, %p399_p0 }
  0x45   :  { %409 = shalt.err (!%p406_p4)
}
  0x46   :  { %185 = dma.vmem_to_hbm [thread:$0]  %s183_s16, 128, %s484_s2, [#allocation6]  }
  0x47   :  { %430 = dma.done.wait [#allocation6], 128  }
  0x48   :  { %431 = vsyncadd [#allocation6], 4294967168 }
  0x49   :  { %189 = vsyncpa [#allocation6], 1 }
  0x4a   :  { %190 = vsyncmov [#allocation2] }
  0x4d   :  { %s191_s20 = vpop.sfrf %190 }
  0x4e   :  { %p352_p5 = scmp.ne.s32.totalorder %s191_s20, 0 }
  0x50   :  { %195 = shalt.err (%p352_p5)  }
  0x51   :  { %197 = vsyncmov [#allocation2 + $0x1] }
  0x54   :  { %s198_s1 = vpop.sfrf %197 }
  0x55   :  { %p353_p6 = scmp.ne.s32.totalorder %s198_s1, 0 }
  0x57   :  { %202 = shalt.err (%p353_p6)  }
  0x58   :  { %204 = vsyncmov [#allocation2 + $0x2] }
  0x5b   :  { %s205_s21 = vpop.sfrf %204 }
  0x5c   :  { %p354_p7 = scmp.ne.s32.totalorder %s205_s21, 0 }
  0x5e   :  { %209 = shalt.err (%p354_p7)  }
  0x5f   :  { %211 = vsyncmov [#allocation2 + $0x3] }
  0x62   :  { %s212_s22 = vpop.sfrf %211 }
  0x63   :  { %p355_p8 = scmp.ne.s32.totalorder %s212_s22, 0 }
  0x65   :  { %216 = shalt.err (%p355_p8)  }
  0x66   :  { %218 = vsyncmov [#allocation2 + $0x4] }
  0x69   :  { %s219_s2 = vpop.sfrf %218 }
  0x6a   :  { %p356_p9 = scmp.ne.s32.totalorder %s219_s2, 0 }
  0x6c   :  { %223 = shalt.err (%p356_p9)  }
  0x6d   :  { %225 = vsyncmov [#allocation2 + $0x5] }
  0x70   :  { %s226_s23 = vpop.sfrf %225 }
  0x71   :  { %p357_p10 = scmp.ne.s32.totalorder %s226_s23, 0 }
  0x73   :  { %230 = shalt.err (%p357_p10)  }
  0x74   :  { %232 = vsyncmov [#allocation2 + $0x6] }
  0x77   :  { %s233_s24 = vpop.sfrf %232 }
  0x78   :  { %p358_p11 = scmp.ne.s32.totalorder %s233_s24, 0 }
  0x7a   :  { %237 = shalt.err (%p358_p11)  }
  0x7b   :  { %239 = vsyncmov [#allocation2 + $0x7] }
  0x7e   :  { %s240_s25 = vpop.sfrf %239 }
  0x7f   :  { %p359_p12 = scmp.ne.s32.totalorder %s240_s25, 0 }
  0x81   :  { %244 = shalt.err (%p359_p12)  }
  0x82   :  { %246 = vsyncmov [#allocation2 + $0x8] }
  0x85   :  { %s247_s26 = vpop.sfrf %246 }
  0x86   :  { %p360_p13 = scmp.ne.s32.totalorder %s247_s26, 0 }
  0x88   :  { %251 = shalt.err (%p360_p13)  }
  0x89   :  { %253 = vsyncmov [#allocation2 + $0x9] }
  0x8c   :  { %s254_s27 = vpop.sfrf %253 }
  0x8d   :  { %p361_p0 = scmp.ne.s32.totalorder %s254_s27, 0 }
  0x8f   :  { %258 = shalt.err (%p361_p0)  }
  0x90   :  { %260 = vsyncmov [#allocation2 + $0xa] }
  0x93   :  { %s261_s28 = vpop.sfrf %260 }
  0x94   :  { %p362_p1 = scmp.ne.s32.totalorder %s261_s28, 0 }
  0x96   :  { %265 = shalt.err (%p362_p1)  }
  0x97   :  { %267 = vsyncmov [#allocation2 + $0xb] }
  0x9a   :  { %s268_s29 = vpop.sfrf %267 }
  0x9b   :  { %p363_p2 = scmp.ne.s32.totalorder %s268_s29, 0 }
  0x9d   :  { %272 = shalt.err (%p363_p2)  }
  0x9e   :  { %274 = vsyncmov [#allocation2 + $0xc] }
  0xa1   :  { %s275_s30 = vpop.sfrf %274 }
  0xa2   :  { %p364_p3 = scmp.ne.s32.totalorder %s275_s30, 0 }
  0xa4   :  { %279 = shalt.err (%p364_p3)  }
  0xa5   :  { %281 = vsyncmov [#allocation2 + $0xd] }
  0xa8   :  { %s282_s3 = vpop.sfrf %281 }
  0xa9   :  { %p365_p4 = scmp.ne.s32.totalorder %s282_s3, 0 }
  0xab   :  { %286 = shalt.err (%p365_p4)  }
  0xac   :  { %288 = vsyncmov [#allocation2 + $0xe] }
  0xaf   :  { %s289_s4 = vpop.sfrf %288 }
  0xb0   :  { %p366_p5 = scmp.ne.s32.totalorder %s289_s4, 0 }
  0xb2   :  { %293 = shalt.err (%p366_p5)  }
  0xb3   :  { %295 = vsyncmov [#allocation2 + $0xf] }
  0xb6   :  { %s296_s5 = vpop.sfrf %295 }
  0xb7   :  { %p367_p6 = scmp.ne.s32.totalorder %s296_s5, 0 }
  0xb9   :  { %300 = shalt.err (%p367_p6)  }

</bundles_post_ra>
